<compile_context>
chip_gen: v7x
topology: tpu7x:2x2x1
jax: 0.10.0
libtpu: 0.0.40
codegen_flags: <defaults>
</compile_context>

<pallas_src>
import jax
import jax.numpy as jnp
from jax.experimental import pallas as pl
from jax.experimental.pallas import tpu as pltpu


def _feature_noise_kernel(scale_ref, x_ref, o_ref):
    # scale_ref: (1, TL) — shared across the batch tile (broadcast over sublanes).
    # x_ref / o_ref: (TN, TL). Single fused multiply + explicit downcast.
    o_ref[...] = (x_ref[...] * scale_ref[...]).astype(o_ref.dtype)


def _noise_scale(seed, feat, uniform_range):
    """scale = 1 + Uniform(-r, r), shape (1, feat); shared across the batch dim."""
    key = jax.random.PRNGKey(seed)
    noise = jax.random.uniform(
        key, (1, feat), dtype=jnp.float32,
        minval=-uniform_range, maxval=uniform_range)
    return 1.0 + noise


def _round_up(a, b):
    return ((a + b - 1) // b) * b


def feature_noise_decoder(x, seed, uniform_range=0.3, donate_input=False):
    """Pallas implementation of FeatureNoiseDecoder.forward(x, _)."""
    N, C, H, W = x.shape
    F = C * H * W
    x2 = x.reshape(N, F)

    scale = _noise_scale(seed, F, uniform_range)
    if x.dtype == jnp.bfloat16:
        # Halve scale DMA / vreg pressure and keep the multiply bf16 on the VPU
        # (v6e/v7x have bf16 VALUs); irrelevant for f32.
        scale = scale.astype(jnp.bfloat16)

    itemsize = jnp.dtype(x.dtype).itemsize
    # Sublane alignment: 8 rows per f32 vreg, 16 for bf16, 32 for int8.
    sub_mult = 8 * max(1, 4 // itemsize)

    # Lane-axis tile: multiple of 128, capped at 4096 lanes.
    TL = min(4096, _round_up(F, 128))
    # Sublane-axis tile: multiple of sub_mult, sized so one operand tile is
    # ~4 MiB (big enough to amortize per-step pipeline overhead, small enough
    # that 2x(in+out) double buffers fit comfortably in scoped VMEM).
    target_tile_bytes = 4 << 20
    tn_target = max(1, target_tile_bytes // (TL * itemsize))
    TN = min(_round_up(N, sub_mult), _round_up(tn_target, sub_mult))
    TN = max(sub_mult, min(TN, 1024))

    grid = (pl.cdiv(F, TL), pl.cdiv(N, TN))  # batch innermost -> scale reused

    # VMEM budget: 2 buffers x (in + out) tiles + 2 x scale slab, with headroom.
    needed = 2 * (2 * TN * TL * itemsize) + 2 * TL * jnp.dtype(scale.dtype).itemsize
    vmem_limit = max(32 << 20, int(needed * 1.25))
    vmem_limit = min(vmem_limit, 48 << 20)  # keep headroom on v7x (64 MiB physical)

    cost = pl.CostEstimate(
        flops=N * F,
        transcendentals=0,
        bytes_accessed=2 * N * F * itemsize + F * jnp.dtype(scale.dtype).itemsize,
    )

    out = pl.pallas_call(
        _feature_noise_kernel,
        out_shape=jax.ShapeDtypeStruct((N, F), x.dtype),
        grid=grid,
        in_specs=[
            pl.BlockSpec((1, TL), lambda f, n: (0, f)),   # scale: constant over n
            pl.BlockSpec((TN, TL), lambda f, n: (n, f)),  # x
        ],
        out_specs=pl.BlockSpec((TN, TL), lambda f, n: (n, f)),
        compiler_params=pltpu.CompilerParams(
            dimension_semantics=("parallel", "parallel"),
            vmem_limit_bytes=vmem_limit,
        ),
        cost_estimate=cost,
        # Only alias when the caller promises not to reuse x afterwards.
        input_output_aliases=({1: 0} if donate_input else {}),
    )(scale, x2)

    return out.reshape(N, C, H, W)


if __name__ == "__main__":
    key = jax.random.PRNGKey(0)
    x = jax.random.normal(key, (2, 4, 16, 16), dtype=jnp.float32)

    seed = 1234
    r = 0.3
    out = feature_noise_decoder(x, seed=seed, uniform_range=r)
    out = jax.block_until_ready(out)

    # Exact reference with the same noise (pure JAX).
    scale = _noise_scale(seed, 4 * 16 * 16, r)
    ref = (x.reshape(2, -1) * scale).astype(x.dtype).reshape(x.shape)
    assert bool(jnp.allclose(out, ref, atol=1e-6, rtol=1e-6))

    # Semantic checks mirroring the PyTorch module:
    # 1) |out - x| <= r * |x|  (noise magnitude bound)
    assert bool(jnp.all(jnp.abs(out - x) <= r * jnp.abs(x) + 1e-5))
    # 2) noise is shared across the batch dim:
    #    (out_0 - x_0) * x_1 == x_0 * noise * x_1 == (out_1 - x_1) * x_0
    lhs = (out[0] - x[0]) * x[1]
    rhs = (out[1] - x[1]) * x[0]
    assert bool(jnp.allclose(lhs, rhs, atol=1e-5))

    print("KERNEL_OK")
</pallas_src>

<mosaic_0001>
module attributes {stable_mosaic.version = 11 : i64} {
  func.func @_feature_noise_kernel(%arg0: i32, %arg1: i32, %arg2: memref<1x1024xf32, #tpu.memory_space<vmem>>, %arg3: memref<8x1024xf32, #tpu.memory_space<vmem>>, %arg4: memref<8x1024xf32, #tpu.memory_space<vmem>>) attributes {dimension_semantics = [#tpu.dimension_semantics<parallel>, #tpu.dimension_semantics<parallel>], iteration_bounds = array<i64: 1, 1>, scalar_prefetch = 0 : i64, scratch_operands = 0 : i64, tpu.core_type = #tpu.core_type<tc>, window_params = [{transform_indices = @transform_0, window_bounds = array<i64: 1, 1024>}, {transform_indices = @transform_1, window_bounds = array<i64: 8, 1024>}, {transform_indices = @transform_2, window_bounds = array<i64: 8, 1024>}]} {
    %c0 = arith.constant 0 : index
    %c0_0 = arith.constant 0 : index
    %0 = vector.load %arg3[%c0, %c0_0] : memref<8x1024xf32, #tpu.memory_space<vmem>>, vector<8x1024xf32>
    %c0_1 = arith.constant 0 : index
    %c0_2 = arith.constant 0 : index
    %1 = vector.load %arg2[%c0_1, %c0_2] : memref<1x1024xf32, #tpu.memory_space<vmem>>, vector<1x1024xf32>
    %2 = vector.broadcast %1 : vector<1x1024xf32> to vector<8x1024xf32>
    %3 = arith.mulf %0, %2 : vector<8x1024xf32>
    %c0_3 = arith.constant 0 : index
    %c0_4 = arith.constant 0 : index
    %4 = vector.load %arg4[%c0_3, %c0_4] : memref<8x1024xf32, #tpu.memory_space<vmem>>, vector<8x1024xf32>
    tpu.vector_store %arg4[%c0_3, %c0_4], %3 {strides = array<i32>} : memref<8x1024xf32, #tpu.memory_space<vmem>>, vector<8x1024xf32>,
    return
  }
  func.func @transform_0(%arg0: i32, %arg1: i32) -> (i32, i32) {
    %c0_i32 = arith.constant 0 : i32
    %c0_i32_0 = arith.constant 0 : i32
    return %c0_i32, %arg0 : i32, i32
  }
  func.func @transform_1(%arg0: i32, %arg1: i32) -> (i32, i32) {
    %c0_i32 = arith.constant 0 : i32
    return %arg1, %arg0 : i32, i32
  }
  func.func @transform_2(%arg0: i32, %arg1: i32) -> (i32, i32) {
    %c0_i32 = arith.constant 0 : i32
    return %arg1, %arg0 : i32, i32
  }
}

</mosaic_0001>

<bundles_post_ra>
// kernel: tpu_custom_call.1
= control target key start
LH: loop header
LB: loop body
LE: loop exit
PB: predicated region body
PF: predicated region fallthrough
CT: control target
= control target key end

     0   :  { %7 = vsyncpa [#allocation3], 0  ;;  %s335_s0 = inlined_call_operand.hbm [shape: f32[1,1024], index: 0, kind: input, shape index: {}]   ;;  %s336_s1 = inlined_call_operand.hbm [shape: f32[2,1024], index: 1, kind: input, shape index: {}]   ;;  %s337_s2 = inlined_call_operand.hbm [shape: f32[2,1024], index: 2, kind: output, shape index: {}]  }
   0x1   :  { %8 = vsyncpa [#allocation6], 0 }
   0x2   :  { %9 = vsyncpa [#allocation4], 0  ;;  %s272_s9 = smov [#allocation2]   ;;  %s200_s13 = scalar_lea.hbm %s335_s0, 128 }
   0x3   :  { %s16_s10 = sshll.u32 %s272_s9, 4  ;;  %p201_p0 = scmp.ne.s32.totalorder %s335_s0, %s200_s13  ;;  %s17_s10 = int_to_ptr.vmem [resolvable:$true] %s16_s10 }
   0x4   :  { %p204_p1 = scmp.lt.u32.totalorder %s200_s13, %s335_s0 }
   0x6   :  { %p206_p2 = pnand %p204_p1, %p201_p0 }
   0x8   :  { %209 = shalt.err (!%p206_p2)
}
   0x9   :  { %s210_s18 = scalar_lea.vmem %s17_s10, 128  ;;  %p215_p4 = scmp.lt.s32.totalorder %s17_s10, %s17_s10 }
   0xa   :  { %p211_p3 = scmp.ne.s32.totalorder %s17_s10, %s210_s18  ;;  %p216_p5 = scmp.lt.s32.totalorder %s210_s18, %s210_s18 }
   0xc   :  { %p217_p6 = por %p216_p5, %p215_p4 }
   0xe   :  { %p218_p7 = pnand %p217_p6, %p211_p3 }
  0x10   :  { %221 = shalt.err (!%p218_p7)
}
  0x11   :  { %19 = dma.hbm_to_vmem [thread:$0]  %s335_s0, 128, %s17_s10, [#allocation3]  }
  0x12   :  { %24 = vsyncadd [#allocation6], 768  ;;  %s273_s21 = smov [#allocation5]   ;;  %s222_s25 = scalar_lea.hbm %s336_s1, 256 }
  0x13   :  { %s25_s22 = sshll.u32 %s273_s21, 4  ;;  %p223_p8 = scmp.ne.s32.totalorder %s336_s1, %s222_s25  ;;  %s26_s22 = int_to_ptr.vmem [resolvable:$true] %s25_s22 }
  0x14   :  { %p226_p9 = scmp.lt.u32.totalorder %s222_s25, %s336_s1 }
  0x16   :  { %p228_p10 = pnand %p226_p9, %p223_p8 }
  0x18   :  { %231 = shalt.err (!%p228_p10)
}
  0x19   :  { %s232_s30 = scalar_lea.vmem %s26_s22, 256  ;;  %s236_s0 = scalar_lea.vmem %s26_s22, 1024 }
  0x1a   :  { %p233_p11 = scmp.ne.s32.totalorder %s26_s22, %s232_s30  ;;  %p237_p12 = scmp.lt.s32.totalorder %s26_s22, %s26_s22 }
  0x1b   :  { %p238_p13 = scmp.lt.s32.totalorder %s236_s0, %s232_s30 }
  0x1d   :  { %p239_p0 = por %p238_p13, %p237_p12 }
  0x1f   :  { %p240_p1 = pnand %p239_p0, %p233_p11 }
  0x21   :  { %243 = shalt.err (!%p240_p1)
}
  0x22   :  { %s274_s3 = smov 256   ;;  %s275_s4 = smov 16  }
  0x23   :  { %31 = dma.hbm_to_vmem [thread:$0]  %s336_s1, 256, %s26_s22, [#allocation6], %s274_s3, %s274_s3, %s275_s4  }
  0x24   :  { %266 = dma.done.wait [#allocation3], 128  }
  0x25   :  { %267 = vsyncadd [#allocation3], 4294967168 }
  0x26   :  { %268 = dma.done.wait [#allocation6], 1024  }
  0x27   :  { %269 = vsyncadd [#allocation6], 4294966272  ;;  %v48_v0 = vlaneseq  ;;  %v276_v1 = vmov 1983009808   ;;  %v46_v13 = vld [vmem:[#allocation2] sm:$0xff]  ;;  %v38_v31 = vld [vmem:[#allocation5] sm:$0xff] }
  0x28   :  { %v85_v2 = vunpack.c.l.s4 %v276_v1  ;;  %v39_v34 = vld [vmem:[#allocation5 + $0x8] sm:$0xff]  ;;  %v40_v39 = vld [vmem:[#allocation5 + $0x10] sm:$0xff]  ;;  %v42_v40 = vld [vmem:[#allocation5 + $0x20] sm:$0xff] }
  0x29   :  { %v49_v3 = vshrl.u32 %v48_v0, 7  ;;  %v44_v43 = vld [vmem:[#allocation5 + $0x30] sm:$0xff]  ;;  %v41_v46 = vld [vmem:[#allocation5 + $0x18] sm:$0xff]  ;;  %v43_v48 = vld [vmem:[#allocation5 + $0x28] sm:$0xff] }
  0x2a   :  { %v86_v4 = vunpack.c.0.s8 %v85_v2  ;;  %v45_v50 = vld [vmem:[#allocation5 + $0x38] sm:$0xff] }
  0x2b   :  { %v50_v5 = vsub.s32 0, %v49_v3  ;;  %v54_v6 = vsub.s32 1, %v49_v3  ;;  %v58_v7 = vsub.s32 2, %v49_v3  ;;  %v62_v8 = vsub.s32 3, %v49_v3 }
  0x2c   :  { %v66_v9 = vsub.s32 4, %v49_v3  ;;  %v70_v10 = vsub.s32 5, %v49_v3  ;;  %v74_v11 = vsub.s32 6, %v49_v3  ;;  %v78_v12 = vsub.s32 7, %v49_v3 }
  0x2d   :  { %v89_v14 = vsub.s32 %v86_v4, %v49_v3  ;;  %v51_v15 = vrot.slane %v46_v13, %v50_v5  ;;  %v55_v16 = vrot.slane %v46_v13, %v54_v6  ;;  %v59_v17 = vrot.slane %v46_v13, %v58_v7 }
  0x2e   :  { %v63_v18 = vrot.slane %v46_v13, %v62_v8  ;;  %v67_v19 = vrot.slane %v46_v13, %v66_v9  ;;  %v71_v20 = vrot.slane %v46_v13, %v70_v10  ;;  %v75_v21 = vrot.slane %v46_v13, %v74_v11 }
  0x2f   :  { %v79_v22 = vrot.slane %v46_v13, %v78_v12  ;;  %v80_v23 = vcombine.low %v51_v15, %v55_v16  ;;  %v81_v25 = vcombine.high %v51_v15, %v55_v16 }
  0x30   :  { %v82_v24 = vcombine.low %v59_v17, %v63_v18  ;;  %v83_v26 = vcombine.high %v59_v17, %v63_v18  ;;  %v116_v27 = vcombine.low %v67_v19, %v71_v20  ;;  %v117_v29 = vcombine.high %v67_v19, %v71_v20 }
  0x31   :  { %v118_v28 = vcombine.low %v75_v21, %v79_v22  ;;  %v119_v30 = vcombine.high %v75_v21, %v79_v22  ;;  %v90_v32 = vrot.slane %v80_v23, %v89_v14  ;;  %v97_v35 = vrot.slane %v81_v25, %v89_v14 }
  0x32   :  { %v104_v33 = vrot.slane %v82_v24, %v89_v14  ;;  %v111_v36 = vrot.slane %v83_v26, %v89_v14  ;;  %v126_v37 = vrot.slane %v116_v27, %v89_v14  ;;  %v133_v41 = vrot.slane %v117_v29, %v89_v14 }
  0x33   :  { %v140_v38 = vrot.slane %v118_v28, %v89_v14  ;;  %v147_v42 = vrot.slane %v119_v30, %v89_v14 }
  0x34   :  { %v112_v44 = vcombine.low %v90_v32, %v104_v33  ;;  %v113_v45 = vcombine.high %v90_v32, %v104_v33  ;;  %v114_v47 = vcombine.low %v97_v35, %v111_v36  ;;  %v115_v49 = vcombine.high %v97_v35, %v111_v36 }
  0x35   :  { %v148_v51 = vcombine.low %v126_v37, %v140_v38  ;;  %v149_v52 = vcombine.high %v126_v37, %v140_v38  ;;  %v150_v53 = vcombine.low %v133_v41, %v147_v42  ;;  %v151_v54 = vcombine.high %v133_v41, %v147_v42 }
  0x36   :  { %v160_v55 = vmul.f32 %v112_v44, %v38_v31  ;;  %v162_v56 = vmul.f32 %v113_v45, %v40_v39  ;;  %v164_v57 = vmul.f32 %v114_v47, %v42_v40  ;;  %v166_v58 = vmul.f32 %v115_v49, %v44_v43 }
  0x37   :  { %v161_v59 = vmul.f32 %v148_v51, %v39_v34  ;;  %v163_v60 = vmul.f32 %v149_v52, %v41_v46  ;;  %v165_v61 = vmul.f32 %v150_v53, %v43_v48  ;;  %v167_v62 = vmul.f32 %v151_v54, %v45_v50 }
  0x38   :  { %168 = vst [vmem:[#allocation7] sm:$0xff] %v160_v55  ;;  %170 = vst [vmem:[#allocation7 + $0x10] sm:$0xff] %v162_v56 }
  0x39   :  { %172 = vst [vmem:[#allocation7 + $0x20] sm:$0xff] %v164_v57  ;;  %174 = vst [vmem:[#allocation7 + $0x30] sm:$0xff] %v166_v58 }
  0x3a   :  { %169 = vst [vmem:[#allocation7 + $0x8] sm:$0xff] %v161_v59  ;;  %171 = vst [vmem:[#allocation7 + $0x18] sm:$0xff] %v163_v60 }
  0x3b   :  { %173 = vst [vmem:[#allocation7 + $0x28] sm:$0xff] %v165_v61  ;;  %175 = vst [vmem:[#allocation7 + $0x38] sm:$0xff] %v167_v62 }
  0x3c   :  { %180 = vsyncadd [#allocation4], 768  ;;  %s277_s1 = smov [#allocation7]  }
  0x3d   :  { %s181_s7 = sshll.u32 %s277_s1, 4  ;;  %s182_s7 = int_to_ptr.vmem [resolvable:$true] %s181_s7 }
  0x3e   :  { %s244_s8 = scalar_lea.vmem %s182_s7, 256  ;;  %s248_s9 = scalar_lea.vmem %s182_s7, 1024 }
  0x3f   :  { %p245_p2 = scmp.ne.s32.totalorder %s182_s7, %s244_s8  ;;  %p249_p3 = scmp.lt.s32.totalorder %s182_s7, %s182_s7 }
  0x40   :  { %p250_p4 = scmp.lt.s32.totalorder %s248_s9, %s244_s8 }
  0x42   :  { %p251_p5 = por %p250_p4, %p249_p3 }
  0x44   :  { %p252_p6 = pnand %p251_p5, %p245_p2 }
  0x46   :  { %255 = shalt.err (!%p252_p6)
}
  0x47   :  { %s256_s12 = scalar_lea.hbm %s337_s2, 256 }
  0x48   :  { %p257_p7 = scmp.ne.s32.totalorder %s337_s2, %s256_s12  ;;  %p260_p8 = scmp.lt.u32.totalorder %s256_s12, %s337_s2 }
  0x4a   :  { %p262_p9 = pnand %p260_p8, %p257_p7 }
  0x4c   :  { %265 = shalt.err (!%p262_p9)
}
  0x4d   :  { %187 = dma.vmem_to_hbm [thread:$0]  %s182_s7, 256, %s337_s2, [#allocation4], %s274_s3, %s274_s3, %s275_s4  }
  0x4e   :  { %270 = dma.done.wait [#allocation4], 1024  }
  0x4f   :  { %271 = vsyncadd [#allocation4], 4294966272 }
  0x50   :  { %191 = vsyncpa [#allocation3], 1 }
  0x51   :  { %192 = vsyncpa [#allocation6], 1 }
  0x52   :  { %193 = vsyncpa [#allocation4], 1 }

</bundles_post_ra>
